<compile_context>
chip_gen: v7x
topology: tpu7x:2x2x1
jax: 0.10.0
libtpu: 0.0.40
codegen_flags: <defaults>
</compile_context>

<pallas_src>
import jax
import jax.numpy as jnp
from jax.experimental import pallas as pl
from jax.experimental.pallas import tpu as pltpu


def _make_divisible(ch, divisor=8, min_ch=None):
    if min_ch is None:
        min_ch = divisor
    new_ch = max(min_ch, int(ch + divisor / 2) // divisor * divisor)
    if new_ch < 0.9 * ch:
        new_ch += divisor
    return new_ch


def _largest_divisor_leq(n, cap):
    for d in range(min(n, cap), 0, -1):
        if n % d == 0:
            return d
    return 1


def _pick_hw_tile(hw, block_n, c, itemsize, budget_bytes=4 << 20, max_tile=2048):
    """Lane-dense HW tile: multiple of 128, bounded by a per-block VMEM budget."""
    if hw <= 128:
        return hw
    max_elems = max(128, budget_bytes // max(1, block_n * c * itemsize))
    tile = min(hw, max_elems, max_tile)
    tile = max(128, (tile // 128) * 128)
    return tile


def _make_pool_excite_kernel(total_hw, tile_hw):
    inv_hw = 1.0 / float(total_hw)

    def kernel(x_ref, w1_ref, b1_ref, w2_ref, b2_ref, scale_ref, acc_ref):
        # x_ref: (bn, C, tile_hw); w1: (C, S); b1: (1, S); w2: (S, C); b2: (1, C)
        # scale_ref: (bn, C, 1) f32 output; acc_ref: (bn, C) f32 scratch.
        hw_step = pl.program_id(1)

        @pl.when(hw_step == 0)
        def _():
            acc_ref[...] = jnp.zeros_like(acc_ref)

        x = x_ref[...].astype(jnp.float32)
        # Mask lanes past the true H*W extent (last tile may be padded).
        col = jax.lax.broadcasted_iota(jnp.int32, x.shape, 2) + hw_step * tile_hw
        x = jnp.where(col < total_hw, x, 0.0)
        acc_ref[...] += jnp.sum(x, axis=-1)                       # (bn, C)

        @pl.when(hw_step == pl.num_programs(1) - 1)
        def _():
            mean = acc_ref[...] * inv_hw                          # (bn, C)
            h = jnp.dot(mean, w1_ref[...],
                        preferred_element_type=jnp.float32) + b1_ref[...]
            h = jnp.maximum(h, 0.0)                               # ReLU
            s = jnp.dot(h, w2_ref[...],
                        preferred_element_type=jnp.float32) + b2_ref[...]
            # hardsigmoid(x) = clip(x/6 + 0.5, 0, 1)
            scale = jnp.clip(s * (1.0 / 6.0) + 0.5, 0.0, 1.0)     # (bn, C)
            scale_ref[...] = scale[:, :, None]

    return kernel


def _scale_mul_kernel(x_ref, scale_ref, o_ref):
    # x_ref/o_ref: (bn, C, tile_hw); scale_ref: (bn, C, 1) f32.
    o_ref[...] = (x_ref[...].astype(jnp.float32) * scale_ref[...]).astype(o_ref.dtype)


def squeeze_excitation_forward(x_nchw, fc1_w, fc1_b, fc2_w, fc2_b):
    """x: (N, C, H, W); fc1_w: (S, C, 1, 1); fc1_b: (S,); fc2_w: (C, S, 1, 1); fc2_b: (C,)."""
    N, C, H, W = x_nchw.shape
    S = fc1_w.shape[0]
    HW = H * W
    itemsize = x_nchw.dtype.itemsize

    x3d = x_nchw.reshape(N, C, HW)                 # free reshape, no transpose
    w1 = fc1_w.reshape(S, C).T                     # (C, S)
    b1 = fc1_b.reshape(1, S)
    w2 = fc2_w.reshape(C, S).T                     # (S, C)
    b2 = fc2_b.reshape(1, C)

    block_n = _largest_divisor_leq(N, 8)
    tile_hw = _pick_hw_tile(HW, block_n, C, itemsize)
    grid = (N // block_n, pl.cdiv(HW, tile_hw))
    x_bytes = N * C * HW * itemsize
    vmem_limit = 48 * 1024 * 1024                  # headroom below v7x's 64 MiB

    # ---- Pass 1: global average pool + SE MLP -> per-(n, c) scale ----------
    scale = pl.pallas_call(
        _make_pool_excite_kernel(HW, tile_hw),
        out_shape=jax.ShapeDtypeStruct((N, C, 1), jnp.float32),
        grid_spec=pltpu.PrefetchScalarGridSpec(
            num_scalar_prefetch=0,
            grid=grid,
            in_specs=[
                pl.BlockSpec((block_n, C, tile_hw), lambda n, h: (n, 0, h)),
                pl.BlockSpec((C, S), lambda n, h: (0, 0)),
                pl.BlockSpec((1, S), lambda n, h: (0, 0)),
                pl.BlockSpec((S, C), lambda n, h: (0, 0)),
                pl.BlockSpec((1, C), lambda n, h: (0, 0)),
            ],
            out_specs=pl.BlockSpec((block_n, C, 1), lambda n, h: (n, 0, 0)),
            scratch_shapes=[pltpu.VMEM((block_n, C), jnp.float32)],
        ),
        compiler_params=pltpu.CompilerParams(
            dimension_semantics=("parallel", "arbitrary"),
            vmem_limit_bytes=vmem_limit,
        ),
        cost_estimate=pl.CostEstimate(
            flops=N * C * HW + 4 * N * C * S,
            transcendentals=0,
            bytes_accessed=x_bytes + (C * S + S + S * C + C + N * C) * 4,
        ),
    )(x3d, w1, b1, w2, b2)

    # ---- Pass 2: broadcast multiply x * scale -------------------------------
    y3d = pl.pallas_call(
        _scale_mul_kernel,
        out_shape=jax.ShapeDtypeStruct((N, C, HW), x_nchw.dtype),
        grid_spec=pltpu.PrefetchScalarGridSpec(
            num_scalar_prefetch=0,
            grid=grid,
            in_specs=[
                pl.BlockSpec((block_n, C, tile_hw), lambda n, h: (n, 0, h)),
                pl.BlockSpec((block_n, C, 1), lambda n, h: (n, 0, 0)),
            ],
            out_specs=pl.BlockSpec((block_n, C, tile_hw), lambda n, h: (n, 0, h)),
        ),
        compiler_params=pltpu.CompilerParams(
            dimension_semantics=("parallel", "parallel"),
            vmem_limit_bytes=vmem_limit,
        ),
        cost_estimate=pl.CostEstimate(
            flops=N * C * HW,
            transcendentals=0,
            bytes_accessed=2 * x_bytes + N * C * 4,
        ),
    )(x3d, scale)

    return y3d.reshape(N, C, H, W)


def reference_forward(x, fc1_w, fc1_b, fc2_w, fc2_b):
    """Pure-JAX reference of SqueezeExcitation.forward."""
    S, C = fc1_w.shape[0], fc1_w.shape[1]
    m = jnp.mean(x, axis=(2, 3))                              # adaptive_avg_pool2d -> (N, C)
    h = jnp.maximum(m @ fc1_w.reshape(S, C).T + fc1_b, 0.0)   # fc1 + relu
    s = h @ fc2_w.reshape(C, S).T + fc2_b                     # fc2
    scale = jnp.clip(s / 6.0 + 0.5, 0.0, 1.0)                 # hardsigmoid
    return x * scale[:, :, None, None]


def _run_case(key, N, C, H, W, squeeze_factor=4):
    S = _make_divisible(C // squeeze_factor, 8)
    kx, k1, k2, k3, k4 = jax.random.split(key, 5)
    x = jax.random.normal(kx, (N, C, H, W), dtype=jnp.float32)
    b1 = 1.0 / (C ** 0.5)
    fc1_w = jax.random.uniform(k1, (S, C, 1, 1), jnp.float32, -b1, b1)
    fc1_b = jax.random.uniform(k2, (S,), jnp.float32, -b1, b1)
    b2 = 1.0 / (S ** 0.5)
    fc2_w = jax.random.uniform(k3, (C, S, 1, 1), jnp.float32, -b2, b2)
    fc2_b = jax.random.uniform(k4, (C,), jnp.float32, -b2, b2)

    out = squeeze_excitation_forward(x, fc1_w, fc1_b, fc2_w, fc2_b)
    out = jax.block_until_ready(out)
    ref = reference_forward(x, fc1_w, fc1_b, fc2_w, fc2_b)
    assert out.shape == (N, C, H, W), out.shape
    assert jnp.allclose(out, ref, atol=1e-4, rtol=1e-4), "mismatch vs reference"


if __name__ == "__main__":
    key = jax.random.PRNGKey(0)
    k_a, k_b = jax.random.split(key)
    # Primary small shape from the spec (single HW tile, single N block).
    _run_case(k_a, N=2, C=4, H=16, W=16)
    # Larger spatial extent: exercises the HW grid, accumulator pattern and
    # the masked partial last tile (2304 = 2048 + 256).
    _run_case(k_b, N=2, C=4, H=48, W=48)
    print("KERNEL_OK")
</pallas_src>

<mosaic_0001>
module attributes {stable_mosaic.version = 11 : i64} {
  func.func @kernel(%arg0: i32, %arg1: i32, %arg2: memref<2x4x256xf32, #tpu.memory_space<vmem>>, %arg3: memref<4x8xf32, #tpu.memory_space<vmem>>, %arg4: memref<1x8xf32, #tpu.memory_space<vmem>>, %arg5: memref<8x4xf32, #tpu.memory_space<vmem>>, %arg6: memref<1x4xf32, #tpu.memory_space<vmem>>, %arg7: memref<2x4x1xf32, #tpu.memory_space<vmem>>, %arg8: memref<2x4xf32, #tpu.memory_space<vmem>>) attributes {dimension_semantics = [#tpu.dimension_semantics<parallel>, #tpu.dimension_semantics<arbitrary>], iteration_bounds = array<i64: 1, 1>, scalar_prefetch = 0 : i64, scratch_operands = 1 : i64, tpu.core_type = #tpu.core_type<tc>, window_params = [{transform_indices = @transform_0, window_bounds = array<i64: 2, 4, 256>}, {pipeline_mode = #tpu.pipeline_mode<synchronous>, transform_indices = @transform_1, window_bounds = array<i64: 4, 8>}, {pipeline_mode = #tpu.pipeline_mode<synchronous>, transform_indices = @transform_2, window_bounds = array<i64: 1, 8>}, {pipeline_mode = #tpu.pipeline_mode<synchronous>, transform_indices = @transform_3, window_bounds = array<i64: 8, 4>}, {pipeline_mode = #tpu.pipeline_mode<synchronous>, transform_indices = @transform_4, window_bounds = array<i64: 1, 4>}, {transform_indices = @transform_5, window_bounds = array<i64: 2, 4, 1>}]} {
    %c0_i32 = arith.constant 0 : i32
    %0 = arith.cmpi eq, %arg1, %c0_i32 : i32
    %1 = arith.extui %0 : i1 to i32
    %c0_i32_0 = arith.constant 0 : i32
    %2 = arith.cmpi ne, %1, %c0_i32_0 : i32
    scf.if %2 {
      %cst_11 = arith.constant 0.000000e+00 : f32
      %19 = vector.broadcast %cst_11 : f32 to vector<2x4xf32>
      %c0_12 = arith.constant 0 : index
      %c0_13 = arith.constant 0 : index
      %20 = vector.load %arg8[%c0_12, %c0_13] : memref<2x4xf32, #tpu.memory_space<vmem>>, vector<2x4xf32>
      tpu.vector_store %arg8[%c0_12, %c0_13], %19 {strides = array<i32>} : memref<2x4xf32, #tpu.memory_space<vmem>>, vector<2x4xf32>,
    } else {
    }
    %c0 = arith.constant 0 : index
    %c0_1 = arith.constant 0 : index
    %c0_2 = arith.constant 0 : index
    %3 = vector.load %arg2[%c0, %c0_1, %c0_2] : memref<2x4x256xf32, #tpu.memory_space<vmem>>, vector<2x4x256xf32>
    %4 = tpu.iota {dimensions = array<i32: 2>} : vector<2x4x256xi32>
    %c256_i32 = arith.constant 256 : i32
    %5 = arith.muli %arg1, %c256_i32 : i32
    %6 = vector.broadcast %5 : i32 to vector<2x4x256xi32>
    %7 = arith.addi %4, %6 : vector<2x4x256xi32>
    %c256_i32_3 = arith.constant 256 : i32
    %8 = vector.broadcast %c256_i32_3 : i32 to vector<2x4x256xi32>
    %9 = arith.cmpi slt, %7, %8 : vector<2x4x256xi32>
    %cst = arith.constant 0.000000e+00 : f32
    %10 = vector.broadcast %cst : f32 to vector<2x4x256xf32>
    %11 = arith.select %9, %3, %10 : vector<2x4x256xi1>, vector<2x4x256xf32>
    %c0_4 = arith.constant 0 : index
    %c0_5 = arith.constant 0 : index
    %12 = vector.load %arg8[%c0_4, %c0_5] : memref<2x4xf32, #tpu.memory_space<vmem>>, vector<2x4xf32>
    %cst_6 = arith.constant dense<0.000000e+00> : vector<2x4xf32>
    %13 = vector.multi_reduction <add>, %11, %cst_6 [2] : vector<2x4x256xf32> to vector<2x4xf32>
    %14 = arith.addf %12, %13 : vector<2x4xf32>
    %c0_7 = arith.constant 0 : index
    %c0_8 = arith.constant 0 : index
    %15 = vector.load %arg8[%c0_7, %c0_8] : memref<2x4xf32, #tpu.memory_space<vmem>>, vector<2x4xf32>
    tpu.vector_store %arg8[%c0_7, %c0_8], %14 {strides = array<i32>} : memref<2x4xf32, #tpu.memory_space<vmem>>, vector<2x4xf32>,
    %c0_i32_9 = arith.constant 0 : i32
    %16 = arith.cmpi eq, %arg1, %c0_i32_9 : i32
    %17 = arith.extui %16 : i1 to i32
    %c0_i32_10 = arith.constant 0 : i32
    %18 = arith.cmpi ne, %17, %c0_i32_10 : i32
    scf.if %18 {
      %c0_11 = arith.constant 0 : index
      %c0_12 = arith.constant 0 : index
      %19 = vector.load %arg8[%c0_11, %c0_12] : memref<2x4xf32, #tpu.memory_space<vmem>>, vector<2x4xf32>
      %cst_13 = arith.constant 3.906250e-03 : f32
      %20 = vector.broadcast %cst_13 : f32 to vector<2x4xf32>
      %21 = arith.mulf %19, %20 : vector<2x4xf32>
      %c0_14 = arith.constant 0 : index
      %c0_15 = arith.constant 0 : index
      %22 = vector.load %arg3[%c0_14, %c0_15] : memref<4x8xf32, #tpu.memory_space<vmem>>, vector<4x8xf32>
      %cst_16 = arith.constant dense<0.000000e+00> : vector<2x8xf32>
      %23 = tpu.matmul %21, %22, %cst_16 {dimension_numbers = #tpu.dot_dimension_numbers<[1], [0], [0], [1], [0, 0, 1, 1], [], []>} : vector<2x4xf32>, vector<4x8xf32>, vector<2x8xf32> -> vector<2x8xf32>
      %c0_17 = arith.constant 0 : index
      %c0_18 = arith.constant 0 : index
      %24 = vector.load %arg4[%c0_17, %c0_18] : memref<1x8xf32, #tpu.memory_space<vmem>>, vector<1x8xf32>
      %25 = vector.broadcast %24 : vector<1x8xf32> to vector<2x8xf32>
      %26 = arith.addf %23, %25 : vector<2x8xf32>
      %cst_19 = arith.constant 0.000000e+00 : f32
      %27 = vector.broadcast %cst_19 : f32 to vector<2x8xf32>
      %28 = arith.maximumf %26, %27 : vector<2x8xf32>
      %c0_20 = arith.constant 0 : index
      %c0_21 = arith.constant 0 : index
      %29 = vector.load %arg5[%c0_20, %c0_21] : memref<8x4xf32, #tpu.memory_space<vmem>>, vector<8x4xf32>
      %cst_22 = arith.constant dense<0.000000e+00> : vector<2x4xf32>
      %30 = tpu.matmul %28, %29, %cst_22 {dimension_numbers = #tpu.dot_dimension_numbers<[1], [0], [0], [1], [0, 0, 1, 1], [], []>} : vector<2x8xf32>, vector<8x4xf32>, vector<2x4xf32> -> vector<2x4xf32>
      %c0_23 = arith.constant 0 : index
      %c0_24 = arith.constant 0 : index
      %31 = vector.load %arg6[%c0_23, %c0_24] : memref<1x4xf32, #tpu.memory_space<vmem>>, vector<1x4xf32>
      %32 = vector.broadcast %31 : vector<1x4xf32> to vector<2x4xf32>
      %33 = arith.addf %30, %32 : vector<2x4xf32>
      %cst_25 = arith.constant 0.166666672 : f32
      %34 = vector.broadcast %cst_25 : f32 to vector<2x4xf32>
      %35 = arith.mulf %33, %34 : vector<2x4xf32>
      %cst_26 = arith.constant 5.000000e-01 : f32
      %36 = vector.broadcast %cst_26 : f32 to vector<2x4xf32>
      %37 = arith.addf %35, %36 : vector<2x4xf32>
      %cst_27 = arith.constant 0.000000e+00 : f32
      %cst_28 = arith.constant 1.000000e+00 : f32
      %38 = vector.broadcast %cst_27 : f32 to vector<2x4xf32>
      %39 = arith.maximumf %38, %37 : vector<2x4xf32>
      %40 = vector.broadcast %cst_28 : f32 to vector<2x4xf32>
      %41 = arith.minimumf %40, %39 : vector<2x4xf32>
      %42 = vector.shape_cast %41 : vector<2x4xf32> to vector<2x4x1xf32>
      %c0_29 = arith.constant 0 : index
      %c0_30 = arith.constant 0 : index
      %c0_31 = arith.constant 0 : index
      %43 = vector.load %arg7[%c0_29, %c0_30, %c0_31] : memref<2x4x1xf32, #tpu.memory_space<vmem>>, vector<2x4x1xf32>
      tpu.vector_store %arg7[%c0_29, %c0_30, %c0_31], %42 {strides = array<i32>} : memref<2x4x1xf32, #tpu.memory_space<vmem>>, vector<2x4x1xf32>,
    } else {
    }
    return
  }
  func.func @transform_0(%arg0: i32, %arg1: i32) -> (i32, i32, i32) {
    %c0_i32 = arith.constant 0 : i32
    %c0_i32_0 = arith.constant 0 : i32
    return %arg0, %c0_i32, %arg1 : i32, i32, i32
  }
  func.func @transform_1(%arg0: i32, %arg1: i32) -> (i32, i32) {
    %c0_i32 = arith.constant 0 : i32
    %c0_i32_0 = arith.constant 0 : i32
    %c0_i32_1 = arith.constant 0 : i32
    return %c0_i32, %c0_i32_0 : i32, i32
  }
  func.func @transform_2(%arg0: i32, %arg1: i32) -> (i32, i32) {
    %c0_i32 = arith.constant 0 : i32
    %c0_i32_0 = arith.constant 0 : i32
    %c0_i32_1 = arith.constant 0 : i32
    return %c0_i32, %c0_i32_0 : i32, i32
  }
  func.func @transform_3(%arg0: i32, %arg1: i32) -> (i32, i32) {
    %c0_i32 = arith.constant 0 : i32
    %c0_i32_0 = arith.constant 0 : i32
    %c0_i32_1 = arith.constant 0 : i32
    return %c0_i32, %c0_i32_0 : i32, i32
  }
  func.func @transform_4(%arg0: i32, %arg1: i32) -> (i32, i32) {
    %c0_i32 = arith.constant 0 : i32
    %c0_i32_0 = arith.constant 0 : i32
    %c0_i32_1 = arith.constant 0 : i32
    return %c0_i32, %c0_i32_0 : i32, i32
  }
  func.func @transform_5(%arg0: i32, %arg1: i32) -> (i32, i32, i32) {
    %c0_i32 = arith.constant 0 : i32
    %c0_i32_0 = arith.constant 0 : i32
    %c0_i32_1 = arith.constant 0 : i32
    return %arg0, %c0_i32, %c0_i32_0 : i32, i32, i32
  }
}

</mosaic_0001>

<bundles_post_ra>
// kernel: tpu_custom_call.1
= control target key start
LH: loop header
LB: loop body
LE: loop exit
PB: predicated region body
PF: predicated region fallthrough
CT: control target
= control target key end

     0   :  { %10 = vsyncpa [#allocation4], 0  ;;  %s338_s18 = smov [#allocation3]   ;;  %s410_s0 = inlined_call_operand.hbm [shape: f32[2,4,256], index: 0, kind: input, shape index: {}]   ;;  %s411_s1 = inlined_call_operand.vmem [shape: f32[4,8], index: 1, kind: input, shape index: {}]   ;;  %s412_s2 = inlined_call_operand.vmem [shape: f32[1,8], index: 2, kind: input, shape index: {}]   ;;  %s413_s3 = inlined_call_operand.vmem [shape: f32[8,4], index: 3, kind: input, shape index: {}]   ;;  %s414_s4 = inlined_call_operand.vmem [shape: f32[1,4], index: 4, kind: input, shape index: {}]   ;;  %s415_s5 = inlined_call_operand.vmem [shape: f32[2,4,1], index: 5, kind: output, shape index: {}]  }
   0x1   :  { %s16_s19 = sshll.u32 %s338_s18, 4  ;;  %s314_s22 = scalar_lea.hbm %s410_s0, 256  ;;  %s17_s19 = int_to_ptr.vmem [resolvable:$true] %s16_s19 }
   0x2   :  { %p315_p0 = scmp.ne.s32.totalorder %s410_s0, %s314_s22  ;;  %p318_p1 = scmp.lt.u32.totalorder %s314_s22, %s410_s0 }
   0x4   :  { %p320_p2 = pnand %p318_p1, %p315_p0 }
   0x6   :  { %323 = shalt.err (!%p320_p2)
}
   0x7   :  { %s324_s27 = scalar_lea.vmem %s17_s19, 256  ;;  %p329_p4 = scmp.lt.s32.totalorder %s17_s19, %s17_s19 }
   0x8   :  { %p325_p3 = scmp.ne.s32.totalorder %s17_s19, %s324_s27  ;;  %p330_p5 = scmp.lt.s32.totalorder %s324_s27, %s324_s27 }
   0xa   :  { %p331_p6 = por %p330_p5, %p329_p4 }
   0xc   :  { %p332_p7 = pnand %p331_p6, %p325_p3 }
   0xe   :  { %335 = shalt.err (!%p332_p7)
}
   0xf   :  { %s339_s28 = smov 128   ;;  %s340_s29 = smov 8  }
  0x10   :  { %22 = dma.hbm_to_vmem [thread:$0]  %s410_s0, 256, %s17_s19, [#allocation4], %s339_s28, %s339_s28, %s340_s29  }
  0x11   :  { %336 = dma.done.wait [#allocation4], 256  }
  0x12   :  { %337 = vsyncadd [#allocation4], 4294967040  ;;  %vm62_vm0 = vcmask 1043456   ;;  %v40_v0 = vld [vmem:[#allocation3] sm:$0xff]  ;;  %v41_v1 = vld [vmem:[#allocation3 + $0x8] sm:$0xff]  ;;  %vm38_vm1 = vcmask 25600   ;;  %v42_v12 = vlaneseq }
  0x13   :  { %v53_v2 = vcombine.high %v40_v0, %v40_v0  ;;  %v63_v3 = vsel %vm62_vm0, %v40_v0, 0.0  ;;  %v54_v4 = vcombine.high %v41_v1, %v41_v1  ;;  %v68_v6 = vsel %vm62_vm0, %v41_v1, 0.0  ;;  %v94_v11 = vld [vmem:[%s411_s1] sm:$0xf] }
  0x14   :  { %v341_v10 = vmov 0.0   ;;  %vm342_vm2 = vmmov 0   ;;  %v43_v13 = vand.u32 127, %v42_v12  ;;  %v76_v14 = vshrl.u32 %v42_v12, 7  ;;  %v180_v25 = vld [vmem:[%s413_s3] sm:$0xff] }
  0x15   :  { %v64_v5 = vsel %vm62_vm0, %v53_v2, 0.0  ;;  %v69_v7 = vsel %vm62_vm0, %v54_v4, 0.0  ;;  %39 = vst.msk [vmem:[#allocation2] sm:$0x3] %vm38_vm1, %v341_v10  ;;  %297 = vmatprep.subr.mxu0 %v341_v10  ;;  %302 = vmatprep.subr.mxu1 %v341_v10  ;;  %vm83_vm3 = vcmask 1041409   ;;  %vm102_vm4 = vcmask 31744  }
  0x16   :  { %v65_v8 = vadd.f32 %v64_v5, %v63_v3  ;;  %v70_v9 = vadd.f32 %v69_v7, %v68_v6  ;;  %298 = vmatpush3.msk.msra.mxu0 %vm62_vm0, %v94_v11  ;;  %299 = vmatprep.mubr.msk.f32.mxu0 %vm342_vm2, %v341_v10  ;;  %v77_v16 = vsub.s32 %v43_v13, %v76_v14  ;;  %v288_v26 = vld [vmem:[%s412_s2] ss:$0 sm:$0xff]  ;;  %vm188_vm5 = vcmask 64512  }
  0x17   :  { %304 = vmatprep.mubr.msk.f32.mxu1 %vm342_vm2, %v341_v10  ;;  %303 = vmatpush3.msra.mxu1 %v180_v25  ;;  %v291_v31 = vld [vmem:[%s414_s4] ss:$0 sm:$0xff]  ;;  %v268_v38 = vsub.s32 0, %v76_v14  ;;  %v275_v41 = vsub.s32 1, %v76_v14  ;;  %vm280_vm6 = vcmask 3072  }
  0x18   :  { %66 = vadd.xlane.f32.xlu0 %v65_v8 }
  0x1c   :  { %71 = vadd.xlane.f32.xlu0 %v70_v9  ;;  %v61_v20 = vld [vmem:[#allocation2] sm:$0x3] }
  0xa5   :  { %v67_v15 = vpop.xlane.xlu0 %66 }
  0xa6   :  { %v78_v18 = vrot.slane %v67_v15, %v77_v16 }
  0xa9   :  { %v72_v17 = vpop.xlane.xlu0 %71 }
  0xaa   :  { %v82_v19 = vrot.slane %v72_v17, %v77_v16 }
  0xac   :  { %v84_v21 = vsel %vm83_vm3, %v82_v19, %v78_v18 }
  0xad   :  { %v86_v22 = vadd.f32 %v84_v21, %v61_v20 }
  0xaf   :  { %88 = vst.msk [vmem:[#allocation2] sm:$0x3] %vm38_vm1, %v86_v22 }
  0xb6   :  { %v92_v23 = vld [vmem:[#allocation2] sm:$0x3] }
  0xb7   :  { %v93_v24 = vmul.f32 0.00390625, %v92_v23 }
  0xb9   :  { %300 = vmatmul.mubr.msk.f32.vlgmr.msra.gmra.mrb[0].mxu0 %vm102_vm4, %v93_v24 }
 0x18c   :  { %v175_v27 = vpop.f32.mrb[0].mxu0 }
 0x18d   :  { %v176_v28 = vadd.f32 %v288_v26, %v175_v27  ;;  %v301_v29 = vpop.f32.mrb[1].mxu0 }
 0x18f   :  { %v179_v30 = vmax.f32 %v176_v28, 0.0 }
 0x191   :  { %305 = vmatmul.mubr.msk.f32.vlgmr.msra.gmra.mrb[0].mxu1 %vm188_vm5, %v179_v30 }
 0x264   :  { %v258_v32 = vpop.f32.mrb[0].mxu1 }
 0x265   :  { %v259_v33 = vadd.f32 %v291_v31, %v258_v32  ;;  %v306_v34 = vpop.f32.mrb[1].mxu1 }
 0x267   :  { %v262_v35 = vmul.f32 0.16666667, %v259_v33 }
 0x269   :  { %v263_v36 = vadd.f32 0.5, %v262_v35 }
 0x26b   :  { %v264_v37 = vmax.f32 %v263_v36, 0.0 }
 0x26d   :  { %v265_v39 = vmin.f32 %v264_v37, 1.0 }
 0x26f   :  { %v269_v40 = vrot.slane %v265_v39, %v268_v38  ;;  %v276_v42 = vrot.slane %v265_v39, %v275_v41 }
 0x271   :  { %271 = vbcast.lane.b32.xlu1 %v269_v40, 256 }
 0x275   :  { %278 = vbcast.lane.b32.xlu1 %v276_v42, 256 }
 0x2e3   :  { %v272_v43 = vpop.permute.xlu1 %271 }
 0x2e4   :  { %281 = vst.msk [vmem:[%s415_s5] sm:$0xf] %vm280_vm6, %v272_v43 }
 0x2e7   :  { %v279_v44 = vpop.permute.xlu1 %278 }
 0x2e8   :  { %282 = vst.msk [vmem:[%s415_s5 + $0x4] sm:$0xf] %vm280_vm6, %v279_v44 }
 0x2e9   :  { %287 = vsyncpa [#allocation4], 1 }

</bundles_post_ra>
